<compile_context>
chip_gen: v6e
topology: v6e:2x2x1
jax: 0.10.0
libtpu: 0.0.40
codegen_flags: <defaults>
</compile_context>

<pallas_src>
import jax
import jax.numpy as jnp
from jax.experimental import pallas as pl
from jax.experimental.pallas import tpu as pltpu

# ---------------- model dims (small, consistent with the forward) -----------
B = 2           # batch
S = 8           # sequence length
H = 32          # hidden size (real model uses 768; synthetic small version)
HP = 128        # hidden padded to full lane width (768 is already 128-aligned)
A = 128         # attention hidden (Linear(H,128))
R1 = 128        # regressor hidden 1
R2 = 64         # regressor hidden 2
R2P = 128       # regressor hidden 2, padded to full lane width
OUT_LANES = 128 # lane-dense output block; column 0 holds the result
VOCAB = 100     # synthetic vocab for the stand-in embedding "encoder"
W_COLS = A + R1 + R2P   # packed bf16 weight-slab columns (384)


def sentiment_kernel(hs_ref, mask_ref, w_ref, vp_ref, out_ref):
    f32, bf16 = jnp.float32, jnp.bfloat16
    tb, s = mask_ref.shape                 # static block shapes
    hp = hs_ref.shape[-1]

    hs = hs_ref[...]                       # [tb*s, HP] bf16 (lane-dense slab)
    mask = mask_ref[...]                   # [tb, s]    f32 (exact 0/1 cast)

    # Packed small params (f32): one [8,128] VMEM tile, resident across the grid.
    ba1 = vp_ref[0:1, :]                   # [1, A]
    wa2_row = vp_ref[1:2, :]               # [1, A]   Linear(128,1) weight as a row
    br1 = vp_ref[2:3, :]                   # [1, R1]
    br2 = vp_ref[3:4, :]                   # [1, R2P] (padded lanes are exact zeros)
    wr3_row = vp_ref[4:5, :]               # [1, R2P] Linear(64,1) weight as a row
    ba2 = vp_ref[5:6, 0:1]                 # [1, 1]   scalar biases packed in lane 0
    br3 = vp_ref[6:7, 0:1]                 # [1, 1]

    # Packed bf16 weight slab: static lane-aligned ref slices (views, no copies).
    wa1 = w_ref[:, 0:A]                    # [HP, A]
    wr1 = w_ref[:, A:A + R1]               # [HP, R1]
    wr2 = w_ref[0:R1, A + R1:W_COLS]       # [R1, R2P]

    # ---- WeightedPooling.attention: Linear(H,128) -> Tanh -> Linear(128,1) ----
    # Lane-dense bf16 MXU matmul (K=HP, N=A=128) with f32 accumulation.
    a1 = jnp.tanh(jnp.dot(hs, wa1, preferred_element_type=f32) + ba1)   # [tb*s, A] f32
    # Linear(128,1) as VPU multiply + lane reduce (avoids an N=1 MXU matmul).
    # f32 leading-dim split: (s, A) trailing tiles stay (8,128)-aligned.
    scores = jnp.sum(a1.reshape(tb, s, A) * wa2_row[None], axis=-1) + ba2   # [tb, s]

    # masked_fill(attention_mask == 0, -1e9); mask is an exact 0/1 float cast.
    scores = jnp.where(mask == 0.0, f32(-1e9), scores)

    # Numerically stable softmax over the sequence axis (f32; exp + EUP vrcp).
    m = jnp.max(scores, axis=-1, keepdims=True)
    e = jnp.exp(scores - m)
    denom = jnp.sum(e, axis=-1, keepdims=True)
    w = e * pl.reciprocal(denom, approx=True)        # [tb, s]; ~1e-3 rel. error

    # pooled[b,:] = sum_s w[b,s] * hs[b,s,:] as a batched bf16 MXU contraction
    # with f32 accumulation.  No f32 materialization of the activation slab
    # (the previous hs.astype(f32) doubled the live footprint / halved the max
    # tile); the MXU has large slack in this HBM-bound kernel.
    hs3 = hs.reshape(tb, s, hp)                      # bf16 leading-dim split
    pooled = jnp.einsum('bqs,bsh->bqh',
                        w[:, None, :].astype(bf16), hs3,
                        preferred_element_type=f32)[:, 0, :]            # [tb, HP] f32

    # TODO(synk): nn.Dropout(0.2) is identity in eval mode; training-mode
    # dropout is not reproduced here.

    # ---- regressor: Linear(H,128) -> ReLU -> Linear(128,64) -> ReLU -> Linear(64,1)
    r1 = jnp.maximum(
        jnp.dot(pooled.astype(bf16), wr1, preferred_element_type=f32) + br1,
        0.0)                                         # [tb, R1] f32
    r2 = jnp.maximum(
        jnp.dot(r1.astype(bf16), wr2, preferred_element_type=f32) + br2,
        0.0)                                         # [tb, R2P] f32 (pad lanes = 0)
    # Linear(64,1) as VPU multiply + lane reduce (padded lanes contribute 0).
    y = jnp.sum(r2 * wr3_row, axis=-1, keepdims=True) + br3             # [tb, 1]

    # Lane-dense output block -> unmasked vector stores; wrapper slices column 0.
    out_ref[...] = jnp.broadcast_to(y, out_ref.shape)


def pack_params(params):
    """Pad / pack the 10 small parameters into 2 consolidated kernel inputs."""
    wa1, ba1, wa2, ba2, wr1, br1, wr2, br2, wr3, br3 = params
    f32, bf16 = jnp.float32, jnp.bfloat16

    wa1_p = jnp.pad(wa1, ((0, HP - H), (0, 0)))            # zero rows: exact padding
    wr1_p = jnp.pad(wr1, ((0, HP - H), (0, 0)))
    wr2_p = jnp.pad(wr2, ((0, HP - R1), (0, R2P - R2)))    # zero rows/cols: exact
    w_all = jnp.concatenate([wa1_p, wr1_p, wr2_p], axis=1).astype(bf16)  # [HP, 384]

    vec = jnp.zeros((8, 128), f32)
    vec = vec.at[0, :A].set(ba1.reshape(-1))
    vec = vec.at[1, :A].set(wa2.reshape(-1))               # Linear(128,1) weight row
    vec = vec.at[2, :R1].set(br1.reshape(-1))
    vec = vec.at[3, :R2].set(br2.reshape(-1))
    vec = vec.at[4, :R2].set(wr3.reshape(-1))              # Linear(64,1) weight row
    vec = vec.at[5, 0].set(ba2[0, 0])                      # true scalars in lane 0
    vec = vec.at[6, 0].set(br3[0, 0])
    return w_all, vec


def sentiment_regressor_forward(hidden_states, attention_mask, params,
                                *, batch_block=None, vmem_limit_bytes=None):
    """hidden_states: [B,S,H] f32, attention_mask: [B,S] 0/1 -> [B] f32.

    Real-scale sizing (H=768, large B*S): per activation row the VMEM cost is
    ~3.5 KiB (2x double-buffered bf16 hs @ 1.5 KiB + f32 a1 @ 0.5 KiB), so:
      * v5e/v6e (128 MiB VMEM): rows_per_block (batch_block*S) in the 20K+
        range; raise vmem_limit_bytes past the scoped default (16 MiB on v5e,
        32 MiB on v6e).
      * v7x (64 MiB VMEM, 2 TCs): halve the block (rows_per_block <= ~10-12K),
        vmem_limit_bytes ~= 48 MiB; if DMA shows exposed in the trace, prefer
        pipeline_mode=pl.Buffered(3) on the hs spec over shrinking the block.
    batch_block must divide B and (at real scale) be a multiple of 8.
    """
    b, s, h = hidden_states.shape
    tb = b if batch_block is None else batch_block
    assert b % tb == 0

    # Layout plumbing stays in the wrapper: pad H -> 128 lanes (exact zero pad;
    # this inflates HBM bytes 4x only for the tiny synthetic H=32 config — the
    # real model's H=768 is already 128-aligned), cast to bf16, flatten (b,s)
    # so the kernel streams a lane-dense 2-D activation slab.
    hs = jnp.pad(hidden_states, ((0, 0), (0, 0), (0, HP - h)))
    hs = hs.astype(jnp.bfloat16).reshape(b * s, HP)
    mask = attention_mask.astype(jnp.float32)               # exact 0/1 values
    w_all, vec = pack_params(params)

    out = pl.pallas_call(
        sentiment_kernel,
        out_shape=jax.ShapeDtypeStruct((b, OUT_LANES), jnp.float32),
        grid=(b // tb,),
        in_specs=[
            # hs streams one batch-block of rows per grid step (auto pipeline).
            pl.BlockSpec((tb * s, HP), lambda i: (i, 0)),
            pl.BlockSpec((tb, s), lambda i: (i, 0)),
            # Constant block index -> weight slab / small-param tile stay
            # VMEM-resident, not re-DMA'd per grid step.
            pl.BlockSpec((HP, W_COLS), lambda i: (0, 0)),
            pl.BlockSpec((8, 128), lambda i: (0, 0)),
        ],
        out_specs=pl.BlockSpec((tb, OUT_LANES), lambda i: (i, 0)),
        compiler_params=pltpu.CompilerParams(
            # Independent batch blocks: shards across v7x's 2 TensorCores;
            # harmless no-op on v5e/v6e.
            dimension_semantics=("parallel",),
            vmem_limit_bytes=vmem_limit_bytes,
        ),
    )(hs, mask, w_all, vec)
    return out[:, 0]   # squeeze(-1)


def init_params(key):
    """Deterministic synthetic parameters (shapes from the module __init__)."""
    ks = jax.random.split(key, 12)

    def lin(kw, kb, fan_in, fan_out):
        bound = 1.0 / jnp.sqrt(jnp.float32(fan_in))
        w = jax.random.uniform(kw, (fan_in, fan_out), jnp.float32, -bound, bound)
        b = jax.random.uniform(kb, (1, fan_out), jnp.float32, -bound, bound)
        return w, b

    wa1, ba1 = lin(ks[0], ks[1], H, A)     # pooling.attention[0]: Linear(H,128)
    wa2, ba2 = lin(ks[2], ks[3], A, 1)     # pooling.attention[2]: Linear(128,1)
    wr1, br1 = lin(ks[4], ks[5], H, R1)    # regressor[0]: Linear(H,128)
    wr2, br2 = lin(ks[6], ks[7], R1, R2)   # regressor[2]: Linear(128,64)
    wr3, br3 = lin(ks[8], ks[9], R2, 1)    # regressor[4]: Linear(64,1)
    return (wa1, ba1, wa2, ba2, wr1, br1, wr2, br2, wr3, br3)


def reference_forward(hidden_states, attention_mask, params):
    """Pure-JAX f32 reference matching the torch module (eval mode)."""
    wa1, ba1, wa2, ba2, wr1, br1, wr2, br2, wr3, br3 = params
    scores = (jnp.tanh(hidden_states @ wa1 + ba1) @ wa2 + ba2)[..., 0]   # [B,S]
    scores = jnp.where(attention_mask == 0, -1e9, scores)
    w = jax.nn.softmax(scores, axis=-1)
    pooled = jnp.sum(w[..., None] * hidden_states, axis=1)
    r1 = jax.nn.relu(pooled @ wr1 + br1)
    r2 = jax.nn.relu(r1 @ wr2 + br2)
    return (r2 @ wr3 + br3)[:, 0]


if __name__ == "__main__":
    key = jax.random.PRNGKey(0)
    k_ids, k_emb, k_par = jax.random.split(key, 3)

    # Synthetic inputs (what the PyTorch forward takes).
    input_ids = jax.random.randint(k_ids, (B, S), 0, VOCAB, dtype=jnp.int32)
    attention_mask = jnp.ones((B, S), dtype=jnp.int32).at[:, S - 2:].set(0)

    # TODO(synk): the pretrained BERT encoder has no clean single-kernel Pallas
    # equivalent; replaced by a deterministic embedding lookup producing
    # last_hidden_state [B, S, H].
    embedding = jax.random.normal(k_emb, (VOCAB, H), jnp.float32) * 0.1
    hidden_states = embedding[input_ids]                     # [B, S, H]

    params = init_params(k_par)

    out = sentiment_regressor_forward(hidden_states,
                                      attention_mask.astype(jnp.float32),
                                      params)
    jax.block_until_ready(out)
    assert out.shape == (B,)

    # Loose-tolerance sanity check vs the f32 reference (kernel runs bf16
    # matmuls with f32 accumulation + approx reciprocal in the softmax).
    ref = reference_forward(hidden_states, attention_mask.astype(jnp.float32),
                            params)
    assert jnp.allclose(out, ref, atol=5e-2, rtol=5e-2), (out, ref)

    print("KERNEL_OK")
</pallas_src>

<mosaic_0001>
module attributes {stable_mosaic.version = 11 : i64} {
  func.func @sentiment_kernel(%arg0: i32, %arg1: memref<16x128xbf16, #tpu.memory_space<vmem>>, %arg2: memref<2x8xf32, #tpu.memory_space<vmem>>, %arg3: memref<128x384xbf16, #tpu.memory_space<vmem>>, %arg4: memref<8x128xf32, #tpu.memory_space<vmem>>, %arg5: memref<2x128xf32, #tpu.memory_space<vmem>>) attributes {dimension_semantics = [#tpu.dimension_semantics<parallel>], iteration_bounds = array<i64: 1>, scalar_prefetch = 0 : i64, scratch_operands = 0 : i64, tpu.core_type = #tpu.core_type<tc>, window_params = [{transform_indices = @transform_0, window_bounds = array<i64: 16, 128>}, {transform_indices = @transform_1, window_bounds = array<i64: 2, 8>}, {pipeline_mode = #tpu.pipeline_mode<synchronous>, transform_indices = @transform_2, window_bounds = array<i64: 128, 384>}, {pipeline_mode = #tpu.pipeline_mode<synchronous>, transform_indices = @transform_3, window_bounds = array<i64: 8, 128>}, {transform_indices = @transform_4, window_bounds = array<i64: 2, 128>}]} {
    %c0 = arith.constant 0 : index
    %c0_0 = arith.constant 0 : index
    %0 = vector.load %arg1[%c0, %c0_0] : memref<16x128xbf16, #tpu.memory_space<vmem>>, vector<16x128xbf16>
    %c0_1 = arith.constant 0 : index
    %c0_2 = arith.constant 0 : index
    %1 = vector.load %arg2[%c0_1, %c0_2] : memref<2x8xf32, #tpu.memory_space<vmem>>, vector<2x8xf32>
    %c0_3 = arith.constant 0 : index
    %c0_4 = arith.constant 0 : index
    %2 = vector.load %arg4[%c0_3, %c0_4] : memref<8x128xf32, #tpu.memory_space<vmem>>, vector<1x128xf32>
    %c1 = arith.constant 1 : index
    %c0_5 = arith.constant 0 : index
    %3 = vector.load %arg4[%c1, %c0_5] : memref<8x128xf32, #tpu.memory_space<vmem>>, vector<1x128xf32>
    %c2 = arith.constant 2 : index
    %c0_6 = arith.constant 0 : index
    %4 = vector.load %arg4[%c2, %c0_6] : memref<8x128xf32, #tpu.memory_space<vmem>>, vector<1x128xf32>
    %c3 = arith.constant 3 : index
    %c0_7 = arith.constant 0 : index
    %5 = vector.load %arg4[%c3, %c0_7] : memref<8x128xf32, #tpu.memory_space<vmem>>, vector<1x128xf32>
    %c4 = arith.constant 4 : index
    %c0_8 = arith.constant 0 : index
    %6 = vector.load %arg4[%c4, %c0_8] : memref<8x128xf32, #tpu.memory_space<vmem>>, vector<1x128xf32>
    %c5 = arith.constant 5 : index
    %c0_9 = arith.constant 0 : index
    %7 = vector.load %arg4[%c5, %c0_9] : memref<8x128xf32, #tpu.memory_space<vmem>>, vector<1x1xf32>
    %c6 = arith.constant 6 : index
    %c0_10 = arith.constant 0 : index
    %8 = vector.load %arg4[%c6, %c0_10] : memref<8x128xf32, #tpu.memory_space<vmem>>, vector<1x1xf32>
    %c0_11 = arith.constant 0 : index
    %c0_12 = arith.constant 0 : index
    %9 = vector.load %arg3[%c0_11, %c0_12] : memref<128x384xbf16, #tpu.memory_space<vmem>>, vector<128x128xbf16>
    %c0_13 = arith.constant 0 : index
    %c128 = arith.constant 128 : index
    %10 = vector.load %arg3[%c0_13, %c128] : memref<128x384xbf16, #tpu.memory_space<vmem>>, vector<128x128xbf16>
    %c0_14 = arith.constant 0 : index
    %c256 = arith.constant 256 : index
    %11 = vector.load %arg3[%c0_14, %c256] : memref<128x384xbf16, #tpu.memory_space<vmem>>, vector<128x128xbf16>
    %cst = arith.constant dense<0.000000e+00> : vector<16x128xf32>
    %12 = tpu.matmul %0, %9, %cst {dimension_numbers = #tpu.dot_dimension_numbers<[1], [0], [0], [1], [0, 0, 1, 1], [], []>} : vector<16x128xbf16>, vector<128x128xbf16>, vector<16x128xf32> -> vector<16x128xf32>
    %13 = vector.broadcast %2 : vector<1x128xf32> to vector<16x128xf32>
    %14 = arith.addf %12, %13 : vector<16x128xf32>
    %15 = math.tanh %14 : vector<16x128xf32>
    %16 = vector.shape_cast %15 : vector<16x128xf32> to vector<2x8x128xf32>
    %17 = vector.shape_cast %3 : vector<1x128xf32> to vector<1x1x128xf32>
    %18 = vector.broadcast %17 : vector<1x1x128xf32> to vector<2x8x128xf32>
    %19 = arith.mulf %16, %18 : vector<2x8x128xf32>
    %cst_15 = arith.constant dense<0.000000e+00> : vector<2x8xf32>
    %20 = vector.multi_reduction <add>, %19, %cst_15 [2] : vector<2x8x128xf32> to vector<2x8xf32>
    %21 = vector.broadcast %7 : vector<1x1xf32> to vector<2x8xf32>
    %22 = arith.addf %20, %21 : vector<2x8xf32>
    %cst_16 = arith.constant 0.000000e+00 : f32
    %23 = vector.broadcast %cst_16 : f32 to vector<2x8xf32>
    %24 = arith.cmpf oeq, %1, %23 : vector<2x8xf32>
    %cst_17 = arith.constant -1.000000e+09 : f32
    %25 = vector.broadcast %cst_17 : f32 to vector<2x8xf32>
    %26 = arith.select %24, %25, %22 : vector<2x8xi1>, vector<2x8xf32>
    %cst_18 = arith.constant dense<0xFF800000> : vector<2xf32>
    %27 = vector.multi_reduction <maximumf>, %26, %cst_18 [1] : vector<2x8xf32> to vector<2xf32>
    %28 = vector.shape_cast %27 : vector<2xf32> to vector<2x1xf32>
    %29 = vector.broadcast %28 : vector<2x1xf32> to vector<2x8xf32>
    %30 = arith.subf %26, %29 : vector<2x8xf32>
    %31 = math.exp %30 : vector<2x8xf32>
    %cst_19 = arith.constant dense<0.000000e+00> : vector<2xf32>
    %32 = vector.multi_reduction <add>, %31, %cst_19 [1] : vector<2x8xf32> to vector<2xf32>
    %33 = vector.shape_cast %32 : vector<2xf32> to vector<2x1xf32>
    %34 = tpu.reciprocal %33 {approx = true} : vector<2x1xf32> -> vector<2x1xf32>
    %35 = vector.broadcast %34 : vector<2x1xf32> to vector<2x8xf32>
    %36 = arith.mulf %31, %35 : vector<2x8xf32>
    %37 = vector.shape_cast %0 : vector<16x128xbf16> to vector<2x8x128xbf16>
    %38 = vector.shape_cast %36 : vector<2x8xf32> to vector<2x1x8xf32>
    %39 = arith.truncf %38 : vector<2x1x8xf32> to vector<2x1x8xbf16>
    "tpu.trace_start"() <{level = 10 : i32, message = "bqs,bsh->bqh"}> : () -> ()
    %cst_20 = arith.constant dense<0.000000e+00> : vector<2x1x128xf32>
    %40 = tpu.matmul %39, %37, %cst_20 {dimension_numbers = #tpu.dot_dimension_numbers<[2], [1], [1], [2], [0, 0, 0, 1, 1, 2], [0], [0]>} : vector<2x1x8xbf16>, vector<2x8x128xbf16>, vector<2x1x128xf32> -> vector<2x1x128xf32>
    "tpu.trace_stop"() : () -> ()
    %41 = vector.shape_cast %40 : vector<2x1x128xf32> to vector<2x128xf32>
    %42 = arith.truncf %41 : vector<2x128xf32> to vector<2x128xbf16>
    %cst_21 = arith.constant dense<0.000000e+00> : vector<2x128xf32>
    %43 = tpu.matmul %42, %10, %cst_21 {dimension_numbers = #tpu.dot_dimension_numbers<[1], [0], [0], [1], [0, 0, 1, 1], [], []>} : vector<2x128xbf16>, vector<128x128xbf16>, vector<2x128xf32> -> vector<2x128xf32>
    %44 = vector.broadcast %4 : vector<1x128xf32> to vector<2x128xf32>
    %45 = arith.addf %43, %44 : vector<2x128xf32>
    %cst_22 = arith.constant 0.000000e+00 : f32
    %46 = vector.broadcast %cst_22 : f32 to vector<2x128xf32>
    %47 = arith.maximumf %45, %46 : vector<2x128xf32>
    %48 = arith.truncf %47 : vector<2x128xf32> to vector<2x128xbf16>
    %cst_23 = arith.constant dense<0.000000e+00> : vector<2x128xf32>
    %49 = tpu.matmul %48, %11, %cst_23 {dimension_numbers = #tpu.dot_dimension_numbers<[1], [0], [0], [1], [0, 0, 1, 1], [], []>} : vector<2x128xbf16>, vector<128x128xbf16>, vector<2x128xf32> -> vector<2x128xf32>
    %50 = vector.broadcast %5 : vector<1x128xf32> to vector<2x128xf32>
    %51 = arith.addf %49, %50 : vector<2x128xf32>
    %cst_24 = arith.constant 0.000000e+00 : f32
    %52 = vector.broadcast %cst_24 : f32 to vector<2x128xf32>
    %53 = arith.maximumf %51, %52 : vector<2x128xf32>
    %54 = vector.broadcast %6 : vector<1x128xf32> to vector<2x128xf32>
    %55 = arith.mulf %53, %54 : vector<2x128xf32>
    %cst_25 = arith.constant dense<0.000000e+00> : vector<2xf32>
    %56 = vector.multi_reduction <add>, %55, %cst_25 [1] : vector<2x128xf32> to vector<2xf32>
    %57 = vector.shape_cast %56 : vector<2xf32> to vector<2x1xf32>
    %58 = vector.broadcast %8 : vector<1x1xf32> to vector<2x1xf32>
    %59 = arith.addf %57, %58 : vector<2x1xf32>
    %60 = vector.shape_cast %59 : vector<2x1xf32> to vector<2x1xf32>
    %61 = vector.broadcast %60 : vector<2x1xf32> to vector<2x128xf32>
    %c0_26 = arith.constant 0 : index
    %c0_27 = arith.constant 0 : index
    %62 = vector.load %arg5[%c0_26, %c0_27] : memref<2x128xf32, #tpu.memory_space<vmem>>, vector<2x128xf32>
    tpu.vector_store %arg5[%c0_26, %c0_27], %61 {strides = array<i32>} : memref<2x128xf32, #tpu.memory_space<vmem>>, vector<2x128xf32>,
    return
  }
  func.func @transform_0(%arg0: i32) -> (i32, i32) {
    %c0_i32 = arith.constant 0 : i32
    %c0_i32_0 = arith.constant 0 : i32
    return %arg0, %c0_i32 : i32, i32
  }
  func.func @transform_1(%arg0: i32) -> (i32, i32) {
    %c0_i32 = arith.constant 0 : i32
    %c0_i32_0 = arith.constant 0 : i32
    return %arg0, %c0_i32 : i32, i32
  }
  func.func @transform_2(%arg0: i32) -> (i32, i32) {
    %c0_i32 = arith.constant 0 : i32
    %c0_i32_0 = arith.constant 0 : i32
    %c0_i32_1 = arith.constant 0 : i32
    return %c0_i32, %c0_i32_0 : i32, i32
  }
  func.func @transform_3(%arg0: i32) -> (i32, i32) {
    %c0_i32 = arith.constant 0 : i32
    %c0_i32_0 = arith.constant 0 : i32
    %c0_i32_1 = arith.constant 0 : i32
    return %c0_i32, %c0_i32_0 : i32, i32
  }
  func.func @transform_4(%arg0: i32) -> (i32, i32) {
    %c0_i32 = arith.constant 0 : i32
    %c0_i32_0 = arith.constant 0 : i32
    return %arg0, %c0_i32 : i32, i32
  }
}

</mosaic_0001>

<bundles_post_ra>
// kernel: tpu_custom_call.1
= control target key start
LH: loop header
LB: loop body
LE: loop exit
PB: predicated region body
PF: predicated region fallthrough
CT: control target
= control target key end

     0   :  { %9 = vsyncpa [#allocation3], 0  ;;  %s1018_s0 = inlined_call_operand.hbm [shape: bf16[16,128], index: 0, kind: input, shape index: {}]   ;;  %s1019_s1 = inlined_call_operand.hbm [shape: f32[2,8], index: 1, kind: input, shape index: {}]   ;;  %s1020_s2 = inlined_call_operand.hbm [shape: bf16[128,384], index: 2, kind: input, shape index: {}]   ;;  %s1021_s3 = inlined_call_operand.hbm [shape: f32[8,128], index: 3, kind: input, shape index: {}]   ;;  %s1022_s4 = inlined_call_operand.hbm [shape: f32[2,128], index: 4, kind: output, shape index: {}]  }
   0x1   :  { %10 = vsyncpa [#allocation6], 0 }
   0x2   :  { %11 = vsyncpa [#allocation9], 0 }
   0x3   :  { %12 = vsyncpa [#allocation4], 0  ;;  %s923_s15 = smov [#allocation5]   ;;  %s924_s17 = smov [#allocation2]  }
   0x4   :  { %s31_s16 = sshll.u32 %s923_s15, 4  ;;  %s18_s18 = sshll.u32 %s924_s17, 4  ;;  %s32_s16 = int_to_ptr.vmem [resolvable:$true] %s31_s16  ;;  %s19_s18 = int_to_ptr.vmem [resolvable:$true] %s18_s18 }
   0x5   :  { %s823_s19 = scalar_lea.vmem %s32_s16, 32  ;;  %p828_p1 = scmp.lt.s32.totalorder %s32_s16, %s32_s16 }
   0x6   :  { %p824_p0 = scmp.ne.s32.totalorder %s32_s16, %s823_s19  ;;  %p829_p2 = scmp.lt.s32.totalorder %s823_s19, %s823_s19 }
   0x8   :  { %p830_p3 = por %p829_p2, %p828_p1 }
   0xa   :  { %p831_p4 = pnand %p830_p3, %p824_p0 }
   0xc   :  { %834 = shalt.err (!%p831_p4)
}
   0xd   :  { %34 = dma.hbm_to_vmem [thread:$0]  %s1019_s1, 32, %s32_s16, [#allocation6]  }
   0xe   :  { %s843_s22 = scalar_lea.vmem %s19_s18, 128  ;;  %p848_p6 = scmp.lt.s32.totalorder %s19_s18, %s19_s18 }
   0xf   :  { %p844_p5 = scmp.ne.s32.totalorder %s19_s18, %s843_s22  ;;  %p849_p7 = scmp.lt.s32.totalorder %s843_s22, %s843_s22 }
  0x11   :  { %p850_p8 = por %p849_p7, %p848_p6 }
  0x13   :  { %p851_p9 = pnand %p850_p8, %p844_p5 }
  0x15   :  { %854 = shalt.err (!%p851_p9)
}
  0x16   :  { %s925_s23 = smov 64   ;;  %s926_s24 = smov 4  }
  0x17   :  { %24 = dma.hbm_to_vmem [thread:$0]  %s1018_s0, 128, %s19_s18, [#allocation3], %s925_s23, %s925_s23, %s926_s24  }
  0x18   :  { %s927_s27 = smov [#allocation7]  }
  0x19   :  { %s40_s28 = sshll.u32 %s927_s27, 4  ;;  %s41_s28 = int_to_ptr.vmem [resolvable:$true] %s40_s28 }
  0x1a   :  { %s863_s29 = scalar_lea.vmem %s41_s28, 3072  ;;  %p868_p11 = scmp.lt.s32.totalorder %s41_s28, %s41_s28 }
  0x1b   :  { %p864_p10 = scmp.ne.s32.totalorder %s41_s28, %s863_s29  ;;  %p869_p12 = scmp.lt.s32.totalorder %s863_s29, %s863_s29 }
  0x1d   :  { %p870_p13 = por %p869_p12, %p868_p11 }
  0x1f   :  { %p871_p0 = pnand %p870_p13, %p864_p10 }
  0x21   :  { %874 = shalt.err (!%p871_p0)
}
  0x22   :  { %s928_s1 = smov 192   ;;  %s929_s30 = smov 12  }
  0x23   :  { %46 = dma.hbm_to_vmem [thread:$0]  %s1020_s2, 3072, %s41_s28, [#allocation6], %s928_s1, %s928_s1, %s929_s30  }
  0x24   :  { %s930_s7 = smov [#allocation8]  }
  0x25   :  { %s53_s8 = sshll.u32 %s930_s7, 4  ;;  %s54_s8 = int_to_ptr.vmem [resolvable:$true] %s53_s8 }
  0x26   :  { %s883_s0 = scalar_lea.vmem %s54_s8, 128  ;;  %p888_p2 = scmp.lt.s32.totalorder %s54_s8, %s54_s8 }
  0x27   :  { %p884_p1 = scmp.ne.s32.totalorder %s54_s8, %s883_s0  ;;  %p889_p3 = scmp.lt.s32.totalorder %s883_s0, %s883_s0 }
  0x29   :  { %p890_p4 = por %p889_p3, %p888_p2 }
  0x2b   :  { %p891_p5 = pnand %p890_p4, %p884_p1 }
  0x2d   :  { %894 = shalt.err (!%p891_p5)
}
  0x2e   :  { %56 = dma.hbm_to_vmem [thread:$0]  %s1021_s3, 128, %s54_s8, [#allocation9]  }
  0x2f   :  { %915 = dma.done.wait [#allocation3], 128  }
  0x30   :  { %916 = vsyncadd [#allocation3], 4294967168 }
  0x31   :  { %917 = dma.done.wait [#allocation6], 3104  }
  0x32   :  { %918 = vsyncadd [#allocation6], 4294964192 }
  0x33   :  { %919 = dma.done.wait [#allocation9], 128  }
  0x34   :  { %920 = vsyncadd [#allocation9], 4294967168  ;;  %v931_v0 = vmov 0.0   ;;  %vm932_vm0 = vmmov 0   ;;  %v782_v1 = vld [vmem:[#allocation7 + $0xa8] ss:$12 sps:$4 sm:$0xff]   ;;  %v248_v25 = vlaneseq }
  0x35   :  { %693 = vmatprep.subr.bf16.mxu0 %v931_v0  ;;  %709 = vmatprep.mubr.msk.bf16.mxu0 %vm932_vm0, %v931_v0  ;;  %v783_v2 = vld [vmem:[#allocation7 + $0x90] ss:$12 sps:$4 sm:$0xff]   ;;  %v784_v3 = vld [vmem:[#allocation7 + $0x78] ss:$12 sps:$4 sm:$0xff]   ;;  %v785_v4 = vld [vmem:[#allocation7 + $0x60] ss:$12 sps:$4 sm:$0xff]  }
  0x36   :  { %713 = vmatprep.subr.bf16.mxu1 %v931_v0  ;;  %715 = vmatprep.mubr.msk.bf16.mxu1 %vm932_vm0, %v931_v0  ;;  %v786_v5 = vld [vmem:[#allocation7 + $0x48] ss:$12 sps:$4 sm:$0xff]   ;;  %v787_v6 = vld [vmem:[#allocation7 + $0x30] ss:$12 sps:$4 sm:$0xff]   ;;  %v788_v7 = vld [vmem:[#allocation7 + $0x18] ss:$12 sps:$4 sm:$0xff]  }
  0x37   :  { %694 = vmatpush3.bf16.msra.mxu0 %v782_v1  ;;  %v789_v8 = vld [vmem:[#allocation7] ss:$12 sps:$4 sm:$0xff]   ;;  %v70_v9 = vld [vmem:[#allocation2] sm:$0xf]  ;;  %v985_v10 = vld [vmem:[#allocation2 + $0x4] sm:$0xf] }
  0x38   :  { %695 = vmatprep.subr.bf16.mxu0 %v931_v0  ;;  %v630_v11 = vcombine.low %v70_v9, %v985_v10  ;;  %v78_v12 = vld [vmem:[#allocation8 + $0x5] sm:$0x1]  ;;  %v629_v13 = vld [vmem:[#allocation8] ss:$0 sm:$0xff]  ;;  %v639_v20 = vld [vmem:[#allocation8 + $0x1] ss:$0 sm:$0xff] }
  0x39   :  { %765 = vpush %v78_v12  ;;  %v249_v26 = vand.u32 127, %v248_v25  ;;  %v251_v27 = vshrl.u32 %v248_v25, 7  ;;  %v72_v33 = vld [vmem:[#allocation5] sm:$0x3]  ;;  %vm258_vm1 = vcmask 1041409   ;;  %vm262_vm3 = vcmask 58368  }
  0x3a   :  { %vm245_vm2 = vcmp.eq.f32.partialorder %v72_v33, 0.0  ;;  %vm305_vm4 = vcmask 1043456   ;;  %v933_v47 = vmov 1966171168   ;;  %vm301_vm5 = vcmask 64512   ;;  %s935_s3 = smov [#allocation10]  }
  0x3b   :  { %696 = vmatpush3.bf16.msra.mxu0 %v783_v2  ;;  %v252_v30 = vsub.s32 %v249_v26, %v251_v27  ;;  %v307_v45 = vsel %vm305_vm4, %v70_v9, 0  ;;  %v276_v48 = vunpack.c.l.s4 %v933_v47  ;;  %v353_v55 = vsel %vm305_vm4, %v985_v10, 0  ;;  %v791_v59 = vld [vmem:[#allocation7 + $0xac] ss:$12 sps:$4 sm:$0xff]   ;;  %v792_v61 = vld [vmem:[#allocation7 + $0x94] ss:$12 sps:$4 sm:$0xff]  }
  0x3c   :  { %697 = vmatprep.subr.bf16.mxu0 %v931_v0  ;;  %714 = vmatpush3.bf16.msra.mxu1 %v307_v45  ;;  %v793_v62 = vld [vmem:[#allocation7 + $0x7c] ss:$12 sps:$4 sm:$0xff]   ;;  %v794_v63 = vld [vmem:[#allocation7 + $0x64] ss:$12 sps:$4 sm:$0xff]   ;;  %v795_v1 = vld [vmem:[#allocation7 + $0x4c] ss:$12 sps:$4 sm:$0xff]  }
  0x3d   :  { %719 = vmatprep.subr.bf16.mxu1 %v931_v0  ;;  %v277_v49 = vunpack.c.0.s8 %v276_v48  ;;  %v796_v2 = vld [vmem:[#allocation7 + $0x34] ss:$12 sps:$4 sm:$0xff]   ;;  %v803_v9 = vld [vmem:[#allocation7 + $0x50] ss:$12 sps:$4 sm:$0xff]   ;;  %v804_v10 = vld [vmem:[#allocation7 + $0x38] ss:$12 sps:$4 sm:$0xff]  }
  0x3e   :  { %v805_v26 = vld [vmem:[#allocation7 + $0x20] ss:$12 sps:$4 sm:$0xff]   ;;  %vm597_vm6 = vcmask 1041408   ;;  %v934_v45 = vmov 0   ;;  %s618_s11 = sshll.u32 %s935_s3, 4  ;;  %s619_s11 = int_to_ptr.vmem [resolvable:$true] %s618_s11 }
  0x3f   :  { %698 = vmatpush3.bf16.msra.mxu0 %v784_v3  ;;  %v280_v50 = vsub.s32 %v277_v49, %v251_v27  ;;  %v797_v3 = vld [vmem:[#allocation7 + $0x1c] ss:$12 sps:$4 sm:$0xff]   ;;  %780 = vset.pattern.permute.xlu1 %v934_v45  ;;  %s895_s12 = scalar_lea.vmem %s619_s11, 32  ;;  %p900_p7 = scmp.lt.s32.totalorder %s619_s11, %s619_s11 }
  0x40   :  { %699 = vmatprep.subr.bf16.mxu0 %v931_v0  ;;  %v806_v27 = vld [vmem:[#allocation7 + $0x8] ss:$12 sps:$4 sm:$0xff]   ;;  %781 = vset.pattern.permute.xlu0 %v934_v45  ;;  %p896_p6 = scmp.ne.s32.totalorder %s619_s11, %s895_s12  ;;  %p901_p8 = scmp.lt.s32.totalorder %s895_s12, %s895_s12 }
  0x42   :  { %p902_p9 = por %p901_p8, %p900_p7 }
  0x43   :  { %700 = vmatpush3.bf16.msra.mxu0 %v785_v4  ;;  %v798_v4 = vld [vmem:[#allocation7 + $0x4] ss:$12 sps:$4 sm:$0xff]  }
  0x44   :  { %701 = vmatprep.subr.bf16.mxu0 %v931_v0  ;;  %p903_p10 = pnand %p902_p9, %p896_p6 }
  0x47   :  { %702 = vmatpush3.bf16.msra.mxu0 %v786_v5  ;;  %v799_v5 = vld [vmem:[#allocation7 + $0xb0] ss:$12 sps:$4 sm:$0xff]  }
  0x48   :  { %703 = vmatprep.subr.bf16.mxu0 %v931_v0 }
  0x4b   :  { %704 = vmatpush3.bf16.msra.mxu0 %v787_v6  ;;  %v800_v6 = vld [vmem:[#allocation7 + $0x98] ss:$12 sps:$4 sm:$0xff]  }
  0x4c   :  { %705 = vmatprep.subr.bf16.mxu0 %v931_v0 }
  0x4f   :  { %706 = vmatpush3.bf16.msra.mxu0 %v788_v7  ;;  %v801_v7 = vld [vmem:[#allocation7 + $0x80] ss:$12 sps:$4 sm:$0xff]  }
  0x50   :  { %707 = vmatprep.subr.bf16.mxu0 %v931_v0 }
  0x53   :  { %708 = vmatpush3.bf16.msra.mxu0 %v789_v8  ;;  %v802_v8 = vld [vmem:[#allocation7 + $0x68] ss:$12 sps:$4 sm:$0xff]  }
  0x54   :  { %745 = vmatprep.subr.bf16.mxu0 %v931_v0 }
  0x56   :  { %710 = vmatmul.mubr.bf16.vlgmr.msra.gmra.mxu0 %v630_v11 }
  0x57   :  { %761 = vmatprep.mubr.msk.bf16.mxu0 %vm932_vm0, %v931_v0  ;;  %746 = vmatpush3.bf16.msra.mxu0 %v799_v5 }
  0x58   :  { %747 = vmatprep.subr.bf16.mxu0 %v931_v0 }
  0x5b   :  { %748 = vmatpush3.bf16.msra.mxu0 %v800_v6 }
  0x5c   :  { %749 = vmatprep.subr.bf16.mxu0 %v931_v0 }
  0x5f   :  { %750 = vmatpush3.bf16.msra.mxu0 %v801_v7 }
  0x60   :  { %751 = vmatprep.subr.bf16.mxu0 %v931_v0 }
  0x63   :  { %752 = vmatpush3.bf16.msra.mxu0 %v802_v8 }
  0x64   :  { %753 = vmatprep.subr.bf16.mxu0 %v931_v0 }
  0x67   :  { %754 = vmatpush3.bf16.msra.mxu0 %v803_v9 }
  0x68   :  { %755 = vmatprep.subr.bf16.mxu0 %v931_v0 }
  0x6a   :  { %s766_s2 = spop %765 }
  0x6b   :  { %v241_v28 = vstv %s766_s2  ;;  %756 = vmatpush3.bf16.msra.mxu0 %v804_v10 }
  0x6c   :  { %757 = vmatprep.subr.bf16.mxu0 %v931_v0 }
  0x6f   :  { %758 = vmatpush3.bf16.msra.mxu0 %v805_v26 }
  0x70   :  { %759 = vmatprep.subr.bf16.mxu0 %v931_v0 }
  0x73   :  { %760 = vmatpush3.bf16.msra.mxu0 %v806_v27 }
 0x116   :  { %v220_v14 = vpop.f32.mrf.mxu0 }
 0x117   :  { %v221_v15 = vadd.f32 %v629_v13, %v220_v14 }
 0x118   :  { %v711_v16 = vpop.f32.mrf.mxu0 }
 0x119   :  { %807 = vtanh.f32 %v221_v15 }
 0x11a   :  { %v223_v17 = vpop.f32.mrf.mxu0 }
 0x11b   :  { %v224_v18 = vadd.f32 %v629_v13, %v223_v17 }
 0x11c   :  { %v712_v19 = vpop.f32.mrf.mxu0 }
 0x11d   :  { %809 = vtanh.f32 %v224_v18 }
 0x126   :  { %v808_v21 = vpop.eup %807 }
 0x127   :  { %v233_v22 = vmul.f32 %v808_v21, %v639_v20 }
 0x129   :  { %235 = vadd.xlane.f32.xlu0 %v233_v22 }
 0x12a   :  { %v810_v23 = vpop.eup %809 }
 0x12b   :  { %v234_v24 = vmul.f32 %v810_v23, %v639_v20 }
 0x12d   :  { %237 = vadd.xlane.f32.xlu0 %v234_v24 }
 0x1b2   :  { %v236_v29 = vpop.xlane.xlu0 %235 }
 0x1b3   :  { %v243_v31 = vadd.f32 %v241_v28, %v236_v29 }
 0x1b5   :  { %v253_v35 = vrot.slane %v243_v31, %v252_v30 }
 0x1b6   :  { %v238_v32 = vpop.xlane.xlu0 %237 }
 0x1b7   :  { %v244_v34 = vadd.f32 %v241_v28, %v238_v32  ;;  %v642_v28 = vld [vmem:[#allocation8 + $0x2] ss:$0 sm:$0xff] }
 0x1b9   :  { %v257_v36 = vrot.slane %v244_v34, %v252_v30 }
 0x1bb   :  { %v259_v37 = vsel %vm258_vm1, %v257_v36, %v253_v35  ;;  %v651_v36 = vld [vmem:[#allocation8 + $0x3] ss:$0 sm:$0xff] }
 0x1bc   :  { %v261_v38 = vsel %vm245_vm2, -1e+09, %v259_v37 }
 0x1bd   :  { %v263_v39 = vsel %vm262_vm3, %v261_v38, -inf }
 0x1be   :  { %264 = vmax.xlane.f32.xlu1 %v263_v39 }
 0x247   :  { %v265_v40 = vpop.xlane.xlu1 %264 }
 0x248   :  { %v266_v41 = vsub.f32 %v261_v38, %v265_v40  ;;  %v660_v40 = vld [vmem:[#allocation8 + $0x4] ss:$0 sm:$0xff] }
 0x24a   :  { %v267_v42 = vmul.f32 1.442695, %v266_v41 }
 0x24c   :  { %811 = vpow2.f32 %v267_v42 }
 0x259   :  { %v812_v43 = vpop.eup %811 }
 0x25a   :  { %v269_v44 = vsel %vm262_vm3, %v812_v43, 0.0 }
 0x25b   :  { %270 = vadd.xlane.f32.xlu1 %v269_v44 }
 0x2e4   :  { %v271_v46 = vpop.xlane.xlu1 %270 }
 0x2e5   :  { %813 = vrcp.f32 %v271_v46  ;;  %v661_v46 = vld [vmem:[#allocation8 + $0x6] ss:$0 sm:$0xff] }
 0x2f2   :  { %v814_v51 = vpop.eup %813 }
 0x2f3   :  { %v273_v52 = vmul.f32 %v814_v51, %v812_v43 }
 0x2f5   :  { %v281_v53 = vrot.slane %v273_v52, %v280_v50 }
 0x2f7   :  { %v289_v54 = vrot.slane %v281_v53, %v280_v50  ;;  %v282_v56 = vcombine.high %v281_v53, %v281_v53 }
 0x2f9   :  { %v299_v57 = vpack.c.bf16 %v289_v54, %v289_v54  ;;  %v296_v58 = vrot.slane %v282_v56, %v280_v50 }
 0x2fb   :  { %716 = vmatmul.mubr.msk.bf16.vlgmr.msra.gmra.mxu1 %vm301_vm5, %v299_v57  ;;  %v300_v60 = vpack.c.bf16 %v296_v58, %v296_v58 }
 0x2fc   :  { %720 = vmatpush3.bf16.msra.mxu1 %v353_v55  ;;  %721 = vmatprep.mubr.msk.bf16.mxu1 %vm932_vm0, %v931_v0 }
 0x2fd   :  { %725 = vmatprep.subr.bf16.mxu1 %v931_v0 }
 0x303   :  { %722 = vmatmul.mubr.msk.bf16.vlgmr.msra.gmra.mxu1 %vm301_vm5, %v300_v60 }
 0x304   :  { %726 = vmatpush3.bf16.msra.mxu1 %v791_v59  ;;  %741 = vmatprep.mubr.msk.bf16.mxu1 %vm932_vm0, %v931_v0 }
 0x305   :  { %727 = vmatprep.subr.bf16.mxu1 %v931_v0 }
 0x308   :  { %728 = vmatpush3.bf16.msra.mxu1 %v792_v61 }
 0x309   :  { %729 = vmatprep.subr.bf16.mxu1 %v931_v0 }
 0x30c   :  { %730 = vmatpush3.bf16.msra.mxu1 %v793_v62 }
 0x30d   :  { %731 = vmatprep.subr.bf16.mxu1 %v931_v0 }
 0x310   :  { %732 = vmatpush3.bf16.msra.mxu1 %v794_v63 }
 0x311   :  { %733 = vmatprep.subr.bf16.mxu1 %v931_v0 }
 0x314   :  { %734 = vmatpush3.bf16.msra.mxu1 %v795_v1 }
 0x315   :  { %735 = vmatprep.subr.bf16.mxu1 %v931_v0 }
 0x318   :  { %736 = vmatpush3.bf16.msra.mxu1 %v796_v2 }
 0x319   :  { %737 = vmatprep.subr.bf16.mxu1 %v931_v0 }
 0x31c   :  { %738 = vmatpush3.bf16.msra.mxu1 %v797_v3 }
 0x31d   :  { %739 = vmatprep.subr.bf16.mxu1 %v931_v0 }
 0x320   :  { %740 = vmatpush3.bf16.msra.mxu1 %v798_v4 }
 0x3bb   :  { %v343_v11 = vpop.f32.mrf.mxu1 }
 0x3bc   :  { %v395_v16 = vpack.c.bf16 %v343_v11, %v343_v11 }
 0x3bd   :  { %v717_v12 = vpop.f32.mrf.mxu1 }
 0x3be   :  { %v403_v21 = vunpack.c.l.b16 %v395_v16 }
 0x3bf   :  { %v346_v13 = vpop.f32.mrf.mxu1 }
 0x3c1   :  { %v718_v14 = vpop.f32.mrf.mxu1 }
 0x3c3   :  { %v389_v15 = vpop.f32.mrf.mxu1 }
 0x3c4   :  { %v396_v17 = vpack.c.bf16 %v389_v15, %v389_v15 }
 0x3c5   :  { %v723_v18 = vpop.f32.mrf.mxu1 }
 0x3c6   :  { %v404_v19 = vunpack.c.l.b16 %v396_v17 }
 0x3c7   :  { %v392_v20 = vpop.f32.mrf.mxu1 }
 0x3c8   :  { %v405_v22 = vrot.slane %v404_v19, 7 }
 0x3c9   :  { %v724_v23 = vpop.f32.mrf.mxu1 }
 0x3ca   :  { %v406_v24 = vsel %vm258_vm1, %v405_v22, %v403_v21 }
 0x3cb   :  { %v407_v25 = vpack.c.b16 %v406_v24, %v406_v24 }
 0x3cd   :  { %742 = vmatmul.mubr.bf16.vlgmr.msra.gmra.mxu1 %v407_v25 }
 0x48d   :  { %v491_v29 = vpop.f32.mrf.mxu1 }
 0x48e   :  { %v492_v30 = vadd.f32 %v642_v28, %v491_v29 }
 0x48f   :  { %v743_v31 = vpop.f32.mrf.mxu1 }
 0x490   :  { %v497_v32 = vmax.f32 %v492_v30, 0.0 }
 0x491   :  { %v494_v33 = vpop.f32.mrf.mxu1 }
 0x492   :  { %v498_v34 = vpack.c.bf16 %v497_v32, %v497_v32 }
 0x493   :  { %v744_v35 = vpop.f32.mrf.mxu1 }
 0x494   :  { %762 = vmatmul.mubr.bf16.vlgmr.msra.gmra.mxu0 %v498_v34 }
 0x554   :  { %v585_v37 = vpop.f32.mrf.mxu0 }
 0x555   :  { %v586_v38 = vadd.f32 %v651_v36, %v585_v37 }
 0x556   :  { %v763_v39 = vpop.f32.mrf.mxu0 }
 0x557   :  { %v591_v41 = vmax.f32 %v586_v38, 0.0 }
 0x558   :  { %v588_v42 = vpop.f32.mrf.mxu0 }
 0x559   :  { %v596_v0 = vmul.f32 %v660_v40, %v591_v41 }
 0x55a   :  { %v764_v43 = vpop.f32.mrf.mxu0 }
 0x55b   :  { %v598_v44 = vsel %vm597_vm6, %v596_v0, 0.0 }
 0x55c   :  { %599 = vadd.xlane.f32.xlu0 %v598_v44 }
 0x5e5   :  { %v600_v47 = vpop.xlane.xlu0 %599 }
 0x5e6   :  { %v605_v48 = vadd.f32 %v661_v46, %v600_v47 }
 0x5e8   :  { %608 = vperm.xlu1 %780, %v605_v48  }
 0x663   :  { %v609_v49 = vpop.permute.xlu1 %608 }
 0x664   :  { %611 = vst [vmem:[#allocation10] sm:$0x3] %v609_v49 }
 0x665   :  { %906 = shalt.err (!%p903_p10)
}
 0x666   :  { %621 = dma.vmem_to_hbm [thread:$0]  %s619_s11, 32, %s1022_s4, [#allocation4]  }
 0x667   :  { %921 = dma.done.wait [#allocation4], 32  }
 0x668   :  { %922 = vsyncadd [#allocation4], 4294967264 }
 0x669   :  { %625 = vsyncpa [#allocation3], 1 }
 0x66a   :  { %626 = vsyncpa [#allocation6], 1 }
 0x66b   :  { %627 = vsyncpa [#allocation9], 1 }
 0x66c   :  { %628 = vsyncpa [#allocation4], 1 }

</bundles_post_ra>
